<compile_context>
chip_gen: v7x
topology: tpu7x:2x2x1
jax: 0.10.0
libtpu: 0.0.40
codegen_flags: <defaults>
</compile_context>

<pallas_src>
import functools

import jax
import jax.numpy as jnp
from jax.experimental import pallas as pl
from jax.experimental.pallas import tpu as pltpu


def _ffn_kernel(x_ref, w1_ref, b1_ref, w2_ref, b2_ref, o_ref, acc_ref,
                *, tile_k, n_chunks):
    """x:(tm,E)  w1:(E,H)  b1:(1,H)  w2:(H,E)  b2:(1,E)  acc:(tm,E) f32."""
    x = x_ref[...]

    # Fold b2 into the accumulator init: one broadcast, outside the chunk loop.
    acc_ref[...] = jnp.broadcast_to(b2_ref[...].astype(jnp.float32), acc_ref.shape)

    # Chunk the hidden dimension so only a (tm, E) accumulator stays live.
    # n_chunks is a static Python int -> fully unrolled at trace time with
    # static, lane-aligned (multiple-of-128 or full-H) slice starts.
    for k in range(n_chunks):
        sl = pl.ds(k * tile_k, tile_k)
        h = jnp.dot(x, w1_ref[:, sl], preferred_element_type=jnp.float32)
        h = jnp.maximum(h + b1_ref[:, sl].astype(jnp.float32), 0.0)      # ReLU
        acc_ref[...] += jnp.dot(h.astype(w2_ref.dtype), w2_ref[sl, :],
                                preferred_element_type=jnp.float32)

    o_ref[...] = acc_ref[...].astype(o_ref.dtype)


def _pick_tile_m(M):
    """MXU-aligned row tile: 512/256/128 when M is large enough for >=2 steps,
    otherwise run small M as a single full-rows grid step."""
    for tm in (512, 256, 128):
        if M >= 2 * tm:
            return tm
    return M


def _pick_tile_k(H, preferred=512):
    """Hidden-dim chunk: lane-aligned divisor of H (or H itself if small)."""
    if H <= preferred:
        return H
    for tk in (preferred, 256, 128):
        if H % tk == 0:
            return tk
    return H  # fallback: no chunking


def feed_forward(x, w1, b1, w2, b2, *, tile_m=None, tile_k=512, use_bf16=False):
    """x: (B, S, E); w1: (E, H); b1: (1, H); w2: (H, E); b2: (1, E).

    Weights are expected pre-transposed to (in, out) layout (PyTorch Linear
    stores (out, in)), so the kernel computes x @ W with no in-kernel transpose.
    """
    B, S, E = x.shape
    H = w1.shape[1]
    assert w1.shape == (E, H) and b1.shape == (1, H)
    assert w2.shape == (H, E) and b2.shape == (1, E)

    M = B * S
    x2 = x.reshape(M, E)
    out_dtype = x.dtype

    if tile_m is None:
        tile_m = _pick_tile_m(M)
    # Pad rows up to a tile multiple so blocks stay (8,128)-legal for any B, S.
    M_pad = pl.cdiv(M, tile_m) * tile_m
    if M_pad != M:
        x2 = jnp.pad(x2, ((0, M_pad - M), (0, 0)))

    tk = _pick_tile_k(H, tile_k)
    n_chunks = H // tk

    if use_bf16:
        # Optional throughput mode: bf16 MXU operands, f32 accumulation.
        # Deviates slightly from the f32 PyTorch reference numerics.
        x2 = x2.astype(jnp.bfloat16)
        w1 = w1.astype(jnp.bfloat16)
        w2 = w2.astype(jnp.bfloat16)

    grid = (M_pad // tile_m,)

    # Explicit VMEM budget sized from the actual resident set (+ headroom).
    resident = (w1.size * w1.dtype.itemsize + w2.size * w2.dtype.itemsize
                + b1.size * b1.dtype.itemsize + b2.size * b2.dtype.itemsize)  # single-buffered
    resident += 2 * 2 * tile_m * E * x2.dtype.itemsize   # x / out double buffers
    resident += tile_m * E * 4                           # f32 accumulator
    vmem_limit = int(min(max(2 * resident, 16 << 20), 96 << 20))

    flops = 4 * M_pad * E * H                            # two matmuls
    bytes_accessed = (x2.size * x2.dtype.itemsize
                      + M_pad * E * jnp.dtype(out_dtype).itemsize
                      + w1.size * w1.dtype.itemsize + w2.size * w2.dtype.itemsize
                      + b1.size * b1.dtype.itemsize + b2.size * b2.dtype.itemsize)

    kernel = functools.partial(_ffn_kernel, tile_k=tk, n_chunks=n_chunks)

    def _call(single_buffer_params):
        def const_spec(shape):
            if single_buffer_params:
                # Grid-invariant block: don't allocate a second pipeline buffer.
                return pl.BlockSpec(shape, lambda i: (0, 0),
                                    pipeline_mode=pl.Buffered(1))
            return pl.BlockSpec(shape, lambda i: (0, 0))

        return pl.pallas_call(
            kernel,
            out_shape=jax.ShapeDtypeStruct((M_pad, E), out_dtype),
            grid_spec=pltpu.PrefetchScalarGridSpec(
                num_scalar_prefetch=0,
                grid=grid,
                in_specs=[
                    pl.BlockSpec((tile_m, E), lambda i: (i, 0)),   # x rows
                    const_spec((E, H)),                            # W1
                    const_spec((1, H)),                            # b1
                    const_spec((H, E)),                            # W2
                    const_spec((1, E)),                            # b2
                ],
                out_specs=pl.BlockSpec((tile_m, E), lambda i: (i, 0)),
                scratch_shapes=[pltpu.VMEM((tile_m, E), jnp.float32)],
            ),
            compiler_params=pltpu.CompilerParams(
                dimension_semantics=("parallel",),
                vmem_limit_bytes=vmem_limit),
            cost_estimate=pl.CostEstimate(flops=flops, transcendentals=0,
                                          bytes_accessed=bytes_accessed),
        )(x2, w1, b1, w2, b2)

    try:
        out2 = _call(True)
    except Exception:
        # Fallback for jax versions where pipeline_mode / Buffered(1) on a
        # grid-invariant BlockSpec is unsupported.
        out2 = _call(False)

    return out2[:M].reshape(B, S, E)


def reference(x, w1, b1, w2, b2):
    """Pure-JAX reference matching the PyTorch forward (dropout p=0 is identity)."""
    h = jnp.maximum(x @ w1 + b1[0], 0.0)
    return h @ w2 + b2[0]


if __name__ == "__main__":
    # Small shapes consistent with the module: embedding E=64, hidden 4E=256.
    B, S, E = 2, 8, 64
    H = 4 * E

    key = jax.random.PRNGKey(0)
    kx, k1, kb1, k2, kb2 = jax.random.split(key, 5)

    x = jax.random.normal(kx, (B, S, E), dtype=jnp.float32)
    # Parameters stored in (in, out) layout (i.e. PyTorch weight.T).
    w1 = jax.random.normal(k1, (E, H), dtype=jnp.float32) * (E ** -0.5)
    b1 = jax.random.normal(kb1, (1, H), dtype=jnp.float32) * 0.01
    w2 = jax.random.normal(k2, (H, E), dtype=jnp.float32) * (H ** -0.5)
    b2 = jax.random.normal(kb2, (1, E), dtype=jnp.float32) * 0.01

    out = feed_forward(x, w1, b1, w2, b2)
    out = jax.block_until_ready(out)

    ref = reference(x, w1, b1, w2, b2)
    assert out.shape == (B, S, E)
    assert jnp.allclose(out, ref, atol=1e-4, rtol=1e-4), "mismatch vs reference"

    print("KERNEL_OK")
</pallas_src>

<mosaic_0001>
module attributes {stable_mosaic.version = 11 : i64} {
  func.func @_ffn_kernel(%arg0: i32, %arg1: memref<16x64xf32, #tpu.memory_space<vmem>>, %arg2: memref<64x256xf32, #tpu.memory_space<vmem>>, %arg3: memref<1x256xf32, #tpu.memory_space<vmem>>, %arg4: memref<256x64xf32, #tpu.memory_space<vmem>>, %arg5: memref<1x64xf32, #tpu.memory_space<vmem>>, %arg6: memref<16x64xf32, #tpu.memory_space<vmem>>, %arg7: memref<16x64xf32, #tpu.memory_space<vmem>>) attributes {dimension_semantics = [#tpu.dimension_semantics<parallel>], iteration_bounds = array<i64: 1>, scalar_prefetch = 0 : i64, scratch_operands = 1 : i64, tpu.core_type = #tpu.core_type<tc>, window_params = [{transform_indices = @transform_0, window_bounds = array<i64: 16, 64>}, {pipeline_mode = #tpu.pipeline_mode<synchronous>, transform_indices = @transform_1, window_bounds = array<i64: 64, 256>}, {pipeline_mode = #tpu.pipeline_mode<synchronous>, transform_indices = @transform_2, window_bounds = array<i64: 1, 256>}, {pipeline_mode = #tpu.pipeline_mode<synchronous>, transform_indices = @transform_3, window_bounds = array<i64: 256, 64>}, {pipeline_mode = #tpu.pipeline_mode<synchronous>, transform_indices = @transform_4, window_bounds = array<i64: 1, 64>}, {transform_indices = @transform_5, window_bounds = array<i64: 16, 64>}]} {
    %c0 = arith.constant 0 : index
    %c0_0 = arith.constant 0 : index
    %0 = vector.load %arg1[%c0, %c0_0] : memref<16x64xf32, #tpu.memory_space<vmem>>, vector<16x64xf32>
    %c0_1 = arith.constant 0 : index
    %c0_2 = arith.constant 0 : index
    %1 = vector.load %arg5[%c0_1, %c0_2] : memref<1x64xf32, #tpu.memory_space<vmem>>, vector<1x64xf32>
    %2 = vector.shape_cast %1 : vector<1x64xf32> to vector<1x64xf32>
    %3 = vector.broadcast %2 : vector<1x64xf32> to vector<16x64xf32>
    %c0_3 = arith.constant 0 : index
    %c0_4 = arith.constant 0 : index
    %4 = vector.load %arg7[%c0_3, %c0_4] : memref<16x64xf32, #tpu.memory_space<vmem>>, vector<16x64xf32>
    tpu.vector_store %arg7[%c0_3, %c0_4], %3 {strides = array<i32>} : memref<16x64xf32, #tpu.memory_space<vmem>>, vector<16x64xf32>,
    %c0_5 = arith.constant 0 : index
    %c0_6 = arith.constant 0 : index
    %5 = vector.load %arg2[%c0_5, %c0_6] : memref<64x256xf32, #tpu.memory_space<vmem>>, vector<64x256xf32>
    %cst = arith.constant dense<0.000000e+00> : vector<16x256xf32>
    %6 = tpu.matmul %0, %5, %cst {dimension_numbers = #tpu.dot_dimension_numbers<[1], [0], [0], [1], [0, 0, 1, 1], [], []>} : vector<16x64xf32>, vector<64x256xf32>, vector<16x256xf32> -> vector<16x256xf32>
    %c0_7 = arith.constant 0 : index
    %c0_8 = arith.constant 0 : index
    %7 = vector.load %arg3[%c0_7, %c0_8] : memref<1x256xf32, #tpu.memory_space<vmem>>, vector<1x256xf32>
    %8 = vector.broadcast %7 : vector<1x256xf32> to vector<16x256xf32>
    %9 = arith.addf %6, %8 : vector<16x256xf32>
    %cst_9 = arith.constant 0.000000e+00 : f32
    %10 = vector.broadcast %cst_9 : f32 to vector<16x256xf32>
    %11 = arith.maximumf %9, %10 : vector<16x256xf32>
    %c0_10 = arith.constant 0 : index
    %c0_11 = arith.constant 0 : index
    %12 = vector.load %arg7[%c0_10, %c0_11] : memref<16x64xf32, #tpu.memory_space<vmem>>, vector<16x64xf32>
    %c0_12 = arith.constant 0 : index
    %c0_13 = arith.constant 0 : index
    %13 = vector.load %arg4[%c0_12, %c0_13] : memref<256x64xf32, #tpu.memory_space<vmem>>, vector<256x64xf32>
    %cst_14 = arith.constant dense<0.000000e+00> : vector<16x64xf32>
    %14 = tpu.matmul %11, %13, %cst_14 {dimension_numbers = #tpu.dot_dimension_numbers<[1], [0], [0], [1], [0, 0, 1, 1], [], []>} : vector<16x256xf32>, vector<256x64xf32>, vector<16x64xf32> -> vector<16x64xf32>
    %15 = arith.addf %12, %14 : vector<16x64xf32>
    %c0_15 = arith.constant 0 : index
    %c0_16 = arith.constant 0 : index
    %16 = vector.load %arg7[%c0_15, %c0_16] : memref<16x64xf32, #tpu.memory_space<vmem>>, vector<16x64xf32>
    tpu.vector_store %arg7[%c0_15, %c0_16], %15 {strides = array<i32>} : memref<16x64xf32, #tpu.memory_space<vmem>>, vector<16x64xf32>,
    %c0_17 = arith.constant 0 : index
    %c0_18 = arith.constant 0 : index
    %17 = vector.load %arg7[%c0_17, %c0_18] : memref<16x64xf32, #tpu.memory_space<vmem>>, vector<16x64xf32>
    %c0_19 = arith.constant 0 : index
    %c0_20 = arith.constant 0 : index
    %18 = vector.load %arg6[%c0_19, %c0_20] : memref<16x64xf32, #tpu.memory_space<vmem>>, vector<16x64xf32>
    tpu.vector_store %arg6[%c0_19, %c0_20], %17 {strides = array<i32>} : memref<16x64xf32, #tpu.memory_space<vmem>>, vector<16x64xf32>,
    return
  }
  func.func @transform_0(%arg0: i32) -> (i32, i32) {
    %c0_i32 = arith.constant 0 : i32
    %c0_i32_0 = arith.constant 0 : i32
    return %arg0, %c0_i32 : i32, i32
  }
  func.func @transform_1(%arg0: i32) -> (i32, i32) {
    %c0_i32 = arith.constant 0 : i32
    %c0_i32_0 = arith.constant 0 : i32
    %c0_i32_1 = arith.constant 0 : i32
    return %c0_i32, %c0_i32_0 : i32, i32
  }
  func.func @transform_2(%arg0: i32) -> (i32, i32) {
    %c0_i32 = arith.constant 0 : i32
    %c0_i32_0 = arith.constant 0 : i32
    %c0_i32_1 = arith.constant 0 : i32
    return %c0_i32, %c0_i32_0 : i32, i32
  }
  func.func @transform_3(%arg0: i32) -> (i32, i32) {
    %c0_i32 = arith.constant 0 : i32
    %c0_i32_0 = arith.constant 0 : i32
    %c0_i32_1 = arith.constant 0 : i32
    return %c0_i32, %c0_i32_0 : i32, i32
  }
  func.func @transform_4(%arg0: i32) -> (i32, i32) {
    %c0_i32 = arith.constant 0 : i32
    %c0_i32_0 = arith.constant 0 : i32
    %c0_i32_1 = arith.constant 0 : i32
    return %c0_i32, %c0_i32_0 : i32, i32
  }
  func.func @transform_5(%arg0: i32) -> (i32, i32) {
    %c0_i32 = arith.constant 0 : i32
    %c0_i32_0 = arith.constant 0 : i32
    return %arg0, %c0_i32 : i32, i32
  }
}

module attributes {stable_mosaic.version = 11 : i64} {
  func.func @_ffn_kernel(%arg0: i32, %arg1: memref<16x64xf32, #tpu.memory_space<vmem>>, %arg2: memref<64x256xf32, #tpu.memory_space<vmem>>, %arg3: memref<1x256xf32, #tpu.memory_space<vmem>>, %arg4: memref<256x64xf32, #tpu.memory_space<vmem>>, %arg5: memref<1x64xf32, #tpu.memory_space<vmem>>, %arg6: memref<16x64xf32, #tpu.memory_space<vmem>>, %arg7: memref<16x64xf32, #tpu.memory_space<vmem>>) attributes {dimension_semantics = [#tpu.dimension_semantics<parallel>], iteration_bounds = array<i64: 1>, scalar_prefetch = 0 : i64, scratch_operands = 1 : i64, tpu.core_type = #tpu.core_type<tc>, window_params = [{transform_indices = @transform_0, window_bounds = array<i64: 16, 64>}, {pipeline_mode = #tpu.pipeline_mode<synchronous>, transform_indices = @transform_1, window_bounds = array<i64: 64, 256>}, {pipeline_mode = #tpu.pipeline_mode<synchronous>, transform_indices = @transform_2, window_bounds = array<i64: 1, 256>}, {pipeline_mode = #tpu.pipeline_mode<synchronous>, transform_indices = @transform_3, window_bounds = array<i64: 256, 64>}, {pipeline_mode = #tpu.pipeline_mode<synchronous>, transform_indices = @transform_4, window_bounds = array<i64: 1, 64>}, {transform_indices = @transform_5, window_bounds = array<i64: 16, 64>}]} {
    %c0 = arith.constant 0 : index
    %c0_0 = arith.constant 0 : index
    %0 = vector.load %arg1[%c0, %c0_0] : memref<16x64xf32, #tpu.memory_space<vmem>>, vector<16x64xf32>
    %c0_1 = arith.constant 0 : index
    %c0_2 = arith.constant 0 : index
    %1 = vector.load %arg5[%c0_1, %c0_2] : memref<1x64xf32, #tpu.memory_space<vmem>>, vector<1x64xf32>
    %2 = vector.shape_cast %1 : vector<1x64xf32> to vector<1x64xf32>
    %3 = vector.broadcast %2 : vector<1x64xf32> to vector<16x64xf32>
    %c0_3 = arith.constant 0 : index
    %c0_4 = arith.constant 0 : index
    %4 = vector.load %arg7[%c0_3, %c0_4] : memref<16x64xf32, #tpu.memory_space<vmem>>, vector<16x64xf32>
    tpu.vector_store %arg7[%c0_3, %c0_4], %3 {strides = array<i32>} : memref<16x64xf32, #tpu.memory_space<vmem>>, vector<16x64xf32>,
    %c0_5 = arith.constant 0 : index
    %c0_6 = arith.constant 0 : index
    %5 = vector.load %arg2[%c0_5, %c0_6] : memref<64x256xf32, #tpu.memory_space<vmem>>, vector<64x256xf32>
    %cst = arith.constant dense<0.000000e+00> : vector<16x256xf32>
    %6 = tpu.matmul %0, %5, %cst {dimension_numbers = #tpu.dot_dimension_numbers<[1], [0], [0], [1], [0, 0, 1, 1], [], []>} : vector<16x64xf32>, vector<64x256xf32>, vector<16x256xf32> -> vector<16x256xf32>
    %c0_7 = arith.constant 0 : index
    %c0_8 = arith.constant 0 : index
    %7 = vector.load %arg3[%c0_7, %c0_8] : memref<1x256xf32, #tpu.memory_space<vmem>>, vector<1x256xf32>
    %8 = vector.broadcast %7 : vector<1x256xf32> to vector<16x256xf32>
    %9 = arith.addf %6, %8 : vector<16x256xf32>
    %cst_9 = arith.constant 0.000000e+00 : f32
    %10 = vector.broadcast %cst_9 : f32 to vector<16x256xf32>
    %11 = arith.maximumf %9, %10 : vector<16x256xf32>
    %c0_10 = arith.constant 0 : index
    %c0_11 = arith.constant 0 : index
    %12 = vector.load %arg7[%c0_10, %c0_11] : memref<16x64xf32, #tpu.memory_space<vmem>>, vector<16x64xf32>
    %c0_12 = arith.constant 0 : index
    %c0_13 = arith.constant 0 : index
    %13 = vector.load %arg4[%c0_12, %c0_13] : memref<256x64xf32, #tpu.memory_space<vmem>>, vector<256x64xf32>
    %cst_14 = arith.constant dense<0.000000e+00> : vector<16x64xf32>
    %14 = tpu.matmul %11, %13, %cst_14 {dimension_numbers = #tpu.dot_dimension_numbers<[1], [0], [0], [1], [0, 0, 1, 1], [], []>} : vector<16x256xf32>, vector<256x64xf32>, vector<16x64xf32> -> vector<16x64xf32>
    %15 = arith.addf %12, %14 : vector<16x64xf32>
    %c0_15 = arith.constant 0 : index
    %c0_16 = arith.constant 0 : index
    %16 = vector.load %arg7[%c0_15, %c0_16] : memref<16x64xf32, #tpu.memory_space<vmem>>, vector<16x64xf32>
    tpu.vector_store %arg7[%c0_15, %c0_16], %15 {strides = array<i32>} : memref<16x64xf32, #tpu.memory_space<vmem>>, vector<16x64xf32>,
    %c0_17 = arith.constant 0 : index
    %c0_18 = arith.constant 0 : index
    %17 = vector.load %arg7[%c0_17, %c0_18] : memref<16x64xf32, #tpu.memory_space<vmem>>, vector<16x64xf32>
    %c0_19 = arith.constant 0 : index
    %c0_20 = arith.constant 0 : index
    %18 = vector.load %arg6[%c0_19, %c0_20] : memref<16x64xf32, #tpu.memory_space<vmem>>, vector<16x64xf32>
    tpu.vector_store %arg6[%c0_19, %c0_20], %17 {strides = array<i32>} : memref<16x64xf32, #tpu.memory_space<vmem>>, vector<16x64xf32>,
    return
  }
  func.func @transform_0(%arg0: i32) -> (i32, i32) {
    %c0_i32 = arith.constant 0 : i32
    %c0_i32_0 = arith.constant 0 : i32
    return %arg0, %c0_i32 : i32, i32
  }
  func.func @transform_1(%arg0: i32) -> (i32, i32) {
    %c0_i32 = arith.constant 0 : i32
    %c0_i32_0 = arith.constant 0 : i32
    %c0_i32_1 = arith.constant 0 : i32
    return %c0_i32, %c0_i32_0 : i32, i32
  }
  func.func @transform_2(%arg0: i32) -> (i32, i32) {
    %c0_i32 = arith.constant 0 : i32
    %c0_i32_0 = arith.constant 0 : i32
    %c0_i32_1 = arith.constant 0 : i32
    return %c0_i32, %c0_i32_0 : i32, i32
  }
  func.func @transform_3(%arg0: i32) -> (i32, i32) {
    %c0_i32 = arith.constant 0 : i32
    %c0_i32_0 = arith.constant 0 : i32
    %c0_i32_1 = arith.constant 0 : i32
    return %c0_i32, %c0_i32_0 : i32, i32
  }
  func.func @transform_4(%arg0: i32) -> (i32, i32) {
    %c0_i32 = arith.constant 0 : i32
    %c0_i32_0 = arith.constant 0 : i32
    %c0_i32_1 = arith.constant 0 : i32
    return %c0_i32, %c0_i32_0 : i32, i32
  }
  func.func @transform_5(%arg0: i32) -> (i32, i32) {
    %c0_i32 = arith.constant 0 : i32
    %c0_i32_0 = arith.constant 0 : i32
    return %arg0, %c0_i32 : i32, i32
  }
}

</mosaic_0001>

<bundles_post_ra>
// kernel: tpu_custom_call.1
= control target key start
LH: loop header
LB: loop body
LE: loop exit
PB: predicated region body
PF: predicated region fallthrough
CT: control target
= control target key end

     0   :  { %v398_v7 = vmov 0.0   ;;  %s610_s0 = inlined_call_operand.vmem [shape: f32[16,64], index: 0, kind: input, shape index: {}]   ;;  %s611_s1 = inlined_call_operand.vmem [shape: f32[64,256], index: 1, kind: input, shape index: {}]   ;;  %s612_s2 = inlined_call_operand.vmem [shape: f32[1,256], index: 2, kind: input, shape index: {}]   ;;  %s613_s3 = inlined_call_operand.vmem [shape: f32[256,64], index: 3, kind: input, shape index: {}]   ;;  %s614_s4 = inlined_call_operand.vmem [shape: f32[1,64], index: 4, kind: input, shape index: {}]   ;;  %s615_s5 = inlined_call_operand.hbm [shape: f32[16,64], index: 5, kind: output, shape index: {}]  }
   0x1   :  { %v34_v0 = vld [vmem:[%s611_s1 + $0x8] sm:$0xff]  ;;  %v36_v1 = vld [vmem:[%s611_s1 + $0x18] sm:$0xff]  ;;  %v33_v2 = vld [vmem:[%s611_s1] sm:$0xff]  ;;  %131 = vmatprep.mubr.f32.mxu0 %v398_v7 }
   0x2   :  { %v322_v3 = vpack.c.bf16 %v36_v1, %v34_v0  ;;  %v35_v4 = vld [vmem:[%s611_s1 + $0x10] sm:$0xff]  ;;  %v38_v5 = vld [vmem:[%s611_s1 + $0x28] sm:$0xff]  ;;  %v40_v6 = vld [vmem:[%s611_s1 + $0x38] sm:$0xff] }
   0x3   :  { %v324_v8 = vpack.c.bf16 %v35_v4, %v33_v2  ;;  %v326_v9 = vpack.c.bf16 %v40_v6, %v38_v5  ;;  %v37_v10 = vld [vmem:[%s611_s1 + $0x20] sm:$0xff]  ;;  %v39_v11 = vld [vmem:[%s611_s1 + $0x30] sm:$0xff]  ;;  %v42_v12 = vld [vmem:[%s611_s1 + $0x48] sm:$0xff] }
   0x4   :  { %323 = vmatprep.subr.bf16.mxu0 %v322_v3  ;;  %v44_v13 = vld [vmem:[%s611_s1 + $0x58] sm:$0xff]  ;;  %v328_v14 = vpack.c.bf16 %v39_v11, %v37_v10  ;;  %v41_v15 = vld [vmem:[%s611_s1 + $0x40] sm:$0xff]  ;;  %v43_v17 = vld [vmem:[%s611_s1 + $0x50] sm:$0xff] }
   0x5   :  { %325 = vmatpush1.bf16.msra.mxu0 %v324_v8  ;;  %v330_v16 = vpack.c.bf16 %v44_v13, %v42_v12  ;;  %v46_v18 = vld [vmem:[%s611_s1 + $0x68] sm:$0xff]  ;;  %v48_v19 = vld [vmem:[%s611_s1 + $0x78] sm:$0xff]  ;;  %v166_v20 = vld [vmem:[%s613_s3 + $0x80] sm:$0xff]  ;;  %v332_v27 = vpack.c.bf16 %v43_v17, %v41_v15 }
   0x6   :  { %327 = vmatprep.subr.bf16.mxu0 %v326_v9  ;;  %v167_v21 = vld [vmem:[%s613_s3 + $0x88] sm:$0xff]  ;;  %v150_v22 = vld [vmem:[%s613_s3] sm:$0xff]  ;;  %v168_v25 = vld [vmem:[%s613_s3 + $0x90] sm:$0xff]  ;;  %v334_v33 = vpack.c.bf16 %v48_v19, %v46_v18 }
   0x7   :  { %v338_v23 = vpack.c.bf16 %v167_v21, %v166_v20  ;;  %v151_v24 = vld [vmem:[%s613_s3 + $0x8] sm:$0xff]  ;;  %v169_v26 = vld [vmem:[%s613_s3 + $0x98] sm:$0xff]  ;;  %v152_v30 = vld [vmem:[%s613_s3 + $0x10] sm:$0xff] }
   0x8   :  { %v340_v28 = vpack.c.bf16 %v151_v24, %v150_v22  ;;  %v342_v29 = vpack.c.bf16 %v169_v26, %v168_v25  ;;  %v153_v31 = vld [vmem:[%s613_s3 + $0x18] sm:$0xff]  ;;  %v170_v32 = vld [vmem:[%s613_s3 + $0xa0] sm:$0xff]  ;;  %v47_v35 = vld [vmem:[%s611_s1 + $0x70] sm:$0xff] }
   0x9   :  { %329 = vmatpush1.bf16.msra.mxu0 %v328_v14  ;;  %v45_v34 = vld [vmem:[%s611_s1 + $0x60] sm:$0xff]  ;;  %339 = vmatprep.subr.bf16.mxu1 %v338_v23  ;;  %v171_v36 = vld [vmem:[%s613_s3 + $0xa8] sm:$0xff]  ;;  %v344_v37 = vpack.c.bf16 %v153_v31, %v152_v30  ;;  %v172_v42 = vld [vmem:[%s613_s3 + $0xb0] sm:$0xff] }
   0xa   :  { %331 = vmatprep.subr.bf16.mxu0 %v330_v16  ;;  %341 = vmatpush3.bf16.msra.mxu1 %v340_v28  ;;  %v346_v38 = vpack.c.bf16 %v171_v36, %v170_v32  ;;  %v154_v39 = vld [vmem:[%s613_s3 + $0x20] sm:$0xff]  ;;  %v155_v40 = vld [vmem:[%s613_s3 + $0x28] sm:$0xff]  ;;  %v336_v41 = vpack.c.bf16 %v47_v35, %v45_v34  ;;  %v173_v43 = vld [vmem:[%s613_s3 + $0xb8] sm:$0xff] }
   0xb   :  { %343 = vmatprep.subr.bf16.mxu1 %v342_v29  ;;  %v348_v44 = vpack.c.bf16 %v155_v40, %v154_v39  ;;  %v350_v45 = vpack.c.bf16 %v173_v43, %v172_v42  ;;  %v156_v46 = vld [vmem:[%s613_s3 + $0x30] sm:$0xff]  ;;  %v157_v47 = vld [vmem:[%s613_s3 + $0x38] sm:$0xff] }
   0xd   :  { %333 = vmatpush1.bf16.msra.mxu0 %v332_v27 }
   0xe   :  { %335 = vmatprep.subr.bf16.mxu0 %v334_v33  ;;  %345 = vmatpush3.bf16.msra.mxu1 %v344_v37 }
   0xf   :  { %347 = vmatprep.subr.bf16.mxu1 %v346_v38 }
  0x10   :  { %10 = vsyncpa [#allocation4], 0  ;;  %v21_v48 = vld [vmem:[%s610_s0] sm:$0xff]  ;;  %vm30_vm0 = vcmask 523264   ;;  %v175_v50 = vld [vmem:[%s613_s3 + $0xc8] sm:$0xff]  ;;  %v352_v51 = vpack.c.bf16 %v157_v47, %v156_v46  ;;  %v51_v11 = vlaneseq  ;;  %s399_s17 = smov [#allocation3]  }
  0x11   :  { %337 = vmatpush1.bf16.msra.mxu0 %v336_v41  ;;  %v174_v49 = vld [vmem:[%s613_s3 + $0xc0] sm:$0xff]  ;;  %v159_v54 = vld [vmem:[%s613_s3 + $0x48] sm:$0xff]  ;;  %v176_v56 = vld [vmem:[%s613_s3 + $0xd0] sm:$0xff] }
  0x12   :  { %349 = vmatpush3.bf16.msra.mxu1 %v348_v44  ;;  %v354_v52 = vpack.c.bf16 %v175_v50, %v174_v49  ;;  %v158_v53 = vld [vmem:[%s613_s3 + $0x40] sm:$0xff]  ;;  %v22_v55 = vld [vmem:[%s610_s0 + $0x8] sm:$0xff]  ;;  %v177_v57 = vld [vmem:[%s613_s3 + $0xd8] sm:$0xff]  ;;  %v52_v12 = vshrl.u32 %v51_v11, 7 }
  0x13   :  { %351 = vmatprep.subr.bf16.mxu1 %v350_v45  ;;  %v356_v58 = vpack.c.bf16 %v159_v54, %v158_v53  ;;  %v358_v59 = vpack.c.bf16 %v177_v57, %v176_v56  ;;  %v160_v60 = vld [vmem:[%s613_s3 + $0x50] sm:$0xff]  ;;  %v161_v61 = vld [vmem:[%s613_s3 + $0x58] sm:$0xff]  ;;  %v178_v62 = vld [vmem:[%s613_s3 + $0xe0] sm:$0xff] }
  0x14   :  { %282 = vmatmul.mubr.msk.f32.vlgmr.msra.gmra.mrb[0].mxu0 %vm30_vm0, %v21_v48  ;;  %v179_v63 = vld [vmem:[%s613_s3 + $0xe8] sm:$0xff]  ;;  %v360_v0 = vpack.c.bf16 %v161_v61, %v160_v60  ;;  %v162_v2 = vld [vmem:[%s613_s3 + $0x60] sm:$0xff]  ;;  %v180_v5 = vld [vmem:[%s613_s3 + $0xf0] sm:$0xff]  ;;  %v53_v13 = vsub.s32 0, %v52_v12  ;;  %v57_v15 = vsub.s32 1, %v52_v12 }
  0x15   :  { %137 = vmatprep.mubr.f32.mxu0 %v398_v7  ;;  %v362_v1 = vpack.c.bf16 %v179_v63, %v178_v62  ;;  %v163_v3 = vld [vmem:[%s613_s3 + $0x68] sm:$0xff]  ;;  %v181_v6 = vld [vmem:[%s613_s3 + $0xf8] sm:$0xff]  ;;  %v164_v8 = vld [vmem:[%s613_s3 + $0x70] sm:$0xff] }
  0x16   :  { %353 = vmatpush3.bf16.msra.mxu1 %v352_v51  ;;  %v364_v4 = vpack.c.bf16 %v163_v3, %v162_v2  ;;  %v366_v7 = vpack.c.bf16 %v181_v6, %v180_v5  ;;  %v165_v9 = vld [vmem:[%s613_s3 + $0x78] sm:$0xff]  ;;  %v49_v14 = vld [vmem:[%s612_s2] sm:$0x3] }
  0x17   :  { %355 = vmatprep.subr.bf16.mxu1 %v354_v52  ;;  %v368_v10 = vpack.c.bf16 %v165_v9, %v164_v8  ;;  %v54_v16 = vrot.slane %v49_v14, %v53_v13  ;;  %v58_v17 = vrot.slane %v49_v14, %v57_v15  ;;  %v281_v30 = vld [vmem:[%s614_s4] ss:$0 sm:$0xff]  ;;  %s270_s4 = sshll.u32 %s399_s17, 4  ;;  %s271_s4 = int_to_ptr.vmem [resolvable:$true] %s270_s4 }
  0x18   :  { %283 = vmatmul.mubr.msk.f32.gmra.mrb[2].mxu0 %vm30_vm0, %v22_v55  ;;  %31 = vst.msk [vmem:[#allocation2] sm:$0xff] %vm30_vm0, %v281_v30  ;;  %32 = vst.msk [vmem:[#allocation2 + $0x8] sm:$0xff] %vm30_vm0, %v281_v30  ;;  %s374_s18 = scalar_lea.vmem %s271_s4, 256  ;;  %p379_p1 = scmp.lt.s32.totalorder %s271_s4, %s271_s4 }
  0x19   :  { %p375_p0 = scmp.ne.s32.totalorder %s271_s4, %s374_s18  ;;  %p380_p2 = scmp.lt.s32.totalorder %s374_s18, %s374_s18 }
  0x1a   :  { %357 = vmatpush3.bf16.msra.mxu1 %v356_v58 }
  0x1b   :  { %359 = vmatprep.subr.bf16.mxu1 %v358_v59  ;;  %p381_p3 = por %p380_p2, %p379_p1 }
  0x1d   :  { %p382_p4 = pnand %p381_p3, %p375_p0 }
  0x1e   :  { %361 = vmatpush3.bf16.msra.mxu1 %v360_v0 }
  0x1f   :  { %363 = vmatprep.subr.bf16.mxu1 %v362_v1  ;;  %v148_v32 = vld [vmem:[#allocation2] sm:$0xff]  ;;  %v149_v37 = vld [vmem:[#allocation2 + $0x8] sm:$0xff] }
  0x22   :  { %365 = vmatpush3.bf16.msra.mxu1 %v364_v4 }
  0x23   :  { %367 = vmatprep.subr.bf16.mxu1 %v366_v7 }
  0x26   :  { %369 = vmatpush3.bf16.msra.mxu1 %v368_v10 }
  0xe7   :  { %v133_v18 = vpop.f32.mrb[0].mxu0 }
  0xe8   :  { %v134_v19 = vadd.f32 %v133_v18, %v54_v16  ;;  %v135_v20 = vpop.f32.mrb[1].mxu0 }
  0xe9   :  { %v136_v21 = vadd.f32 %v135_v20, %v58_v17 }
  0xea   :  { %v144_v24 = vmax.f32 %v134_v19, 0.0 }
  0xeb   :  { %v139_v22 = vpop.f32.mrb[2].mxu0  ;;  %v145_v23 = vmax.f32 %v136_v21, 0.0 }
  0xec   :  { %v140_v25 = vadd.f32 %v139_v22, %v54_v16  ;;  %v141_v26 = vpop.f32.mrb[3].mxu0 }
  0xed   :  { %v142_v27 = vadd.f32 %v141_v26, %v58_v17  ;;  %246 = vmatprep.mubr.f32.mxu1 %v145_v23 }
  0xee   :  { %247 = vmatmul.mubr.f32.vlgmr.msra.gmra.mrb[0].mxu1 %v144_v24  ;;  %v146_v29 = vmax.f32 %v140_v25, 0.0 }
  0xef   :  { %v147_v28 = vmax.f32 %v142_v27, 0.0 }
  0xf1   :  { %251 = vmatprep.mubr.f32.mxu1 %v147_v28 }
  0xf2   :  { %252 = vmatmul.mubr.f32.gmra.mrb[2].mxu1 %v146_v29 }
 0x1c1   :  { %v316_v31 = vpop.f32.mrb[0].mxu1 }
 0x1c2   :  { %v317_v33 = vpop.f32.mrb[1].mxu1 }
 0x1c3   :  { %v318_v34 = vadd.f32 %v317_v33, %v316_v31 }
 0x1c5   :  { %v257_v35 = vadd.f32 %v318_v34, %v148_v32  ;;  %v319_v36 = vpop.f32.mrb[2].mxu1 }
 0x1c6   :  { %v320_v38 = vpop.f32.mrb[3].mxu1 }
 0x1c7   :  { %259 = vst.msk [vmem:[#allocation2] sm:$0xff] %vm30_vm0, %v257_v35  ;;  %v321_v39 = vadd.f32 %v320_v38, %v319_v36 }
 0x1c9   :  { %v258_v40 = vadd.f32 %v321_v39, %v149_v37 }
 0x1cb   :  { %260 = vst.msk [vmem:[#allocation2 + $0x8] sm:$0xff] %vm30_vm0, %v258_v40 }
 0x1ce   :  { %v261_v41 = vld [vmem:[#allocation2] sm:$0xff] }
 0x1cf   :  { %263 = vst.msk [vmem:[#allocation3] sm:$0xff] %vm30_vm0, %v261_v41 }
 0x1d2   :  { %v262_v42 = vld [vmem:[#allocation2 + $0x8] sm:$0xff] }
 0x1d3   :  { %264 = vst.msk [vmem:[#allocation3 + $0x8] sm:$0xff] %vm30_vm0, %v262_v42 }
 0x1d4   :  { %385 = shalt.err (!%p382_p4)
}
 0x1d5   :  { %s386_s21 = scalar_lea.hbm %s615_s5, 256 }
 0x1d6   :  { %p387_p5 = scmp.ne.s32.totalorder %s615_s5, %s386_s21  ;;  %p390_p6 = scmp.lt.u32.totalorder %s386_s21, %s615_s5 }
 0x1d8   :  { %p392_p7 = pnand %p390_p6, %p387_p5 }
 0x1da   :  { %395 = shalt.err (!%p392_p7)
}
 0x1db   :  { %s400_s24 = smov 128   ;;  %s401_s25 = smov 8  }
 0x1dc   :  { %276 = dma.vmem_to_hbm [thread:$0]  %s271_s4, 256, %s615_s5, [#allocation4], %s400_s24, %s400_s24, %s401_s25  }
 0x1dd   :  { %396 = dma.done.wait [#allocation4], 256  }
 0x1de   :  { %397 = vsyncadd [#allocation4], 4294967040 }
 0x1df   :  { %280 = vsyncpa [#allocation4], 1 }

// kernel: tpu_custom_call.1
= control target key start
LH: loop header
LB: loop body
LE: loop exit
PB: predicated region body
PF: predicated region fallthrough
CT: control target
= control target key end

     0   :  { %v398_v7 = vmov 0.0   ;;  %s610_s0 = inlined_call_operand.vmem [shape: f32[16,64], index: 0, kind: input, shape index: {}]   ;;  %s611_s1 = inlined_call_operand.vmem [shape: f32[64,256], index: 1, kind: input, shape index: {}]   ;;  %s612_s2 = inlined_call_operand.vmem [shape: f32[1,256], index: 2, kind: input, shape index: {}]   ;;  %s613_s3 = inlined_call_operand.vmem [shape: f32[256,64], index: 3, kind: input, shape index: {}]   ;;  %s614_s4 = inlined_call_operand.vmem [shape: f32[1,64], index: 4, kind: input, shape index: {}]   ;;  %s615_s5 = inlined_call_operand.hbm [shape: f32[16,64], index: 5, kind: output, shape index: {}]  }
   0x1   :  { %v34_v0 = vld [vmem:[%s611_s1 + $0x8] sm:$0xff]  ;;  %v36_v1 = vld [vmem:[%s611_s1 + $0x18] sm:$0xff]  ;;  %v33_v2 = vld [vmem:[%s611_s1] sm:$0xff]  ;;  %131 = vmatprep.mubr.f32.mxu0 %v398_v7 }
   0x2   :  { %v322_v3 = vpack.c.bf16 %v36_v1, %v34_v0  ;;  %v35_v4 = vld [vmem:[%s611_s1 + $0x10] sm:$0xff]  ;;  %v38_v5 = vld [vmem:[%s611_s1 + $0x28] sm:$0xff]  ;;  %v40_v6 = vld [vmem:[%s611_s1 + $0x38] sm:$0xff] }
   0x3   :  { %v324_v8 = vpack.c.bf16 %v35_v4, %v33_v2  ;;  %v326_v9 = vpack.c.bf16 %v40_v6, %v38_v5  ;;  %v37_v10 = vld [vmem:[%s611_s1 + $0x20] sm:$0xff]  ;;  %v39_v11 = vld [vmem:[%s611_s1 + $0x30] sm:$0xff]  ;;  %v42_v12 = vld [vmem:[%s611_s1 + $0x48] sm:$0xff] }
   0x4   :  { %323 = vmatprep.subr.bf16.mxu0 %v322_v3  ;;  %v44_v13 = vld [vmem:[%s611_s1 + $0x58] sm:$0xff]  ;;  %v328_v14 = vpack.c.bf16 %v39_v11, %v37_v10  ;;  %v41_v15 = vld [vmem:[%s611_s1 + $0x40] sm:$0xff]  ;;  %v43_v17 = vld [vmem:[%s611_s1 + $0x50] sm:$0xff] }
   0x5   :  { %325 = vmatpush1.bf16.msra.mxu0 %v324_v8  ;;  %v330_v16 = vpack.c.bf16 %v44_v13, %v42_v12  ;;  %v46_v18 = vld [vmem:[%s611_s1 + $0x68] sm:$0xff]  ;;  %v48_v19 = vld [vmem:[%s611_s1 + $0x78] sm:$0xff]  ;;  %v166_v20 = vld [vmem:[%s613_s3 + $0x80] sm:$0xff]  ;;  %v332_v27 = vpack.c.bf16 %v43_v17, %v41_v15 }
   0x6   :  { %327 = vmatprep.subr.bf16.mxu0 %v326_v9  ;;  %v167_v21 = vld [vmem:[%s613_s3 + $0x88] sm:$0xff]  ;;  %v150_v22 = vld [vmem:[%s613_s3] sm:$0xff]  ;;  %v168_v25 = vld [vmem:[%s613_s3 + $0x90] sm:$0xff]  ;;  %v334_v33 = vpack.c.bf16 %v48_v19, %v46_v18 }
   0x7   :  { %v338_v23 = vpack.c.bf16 %v167_v21, %v166_v20  ;;  %v151_v24 = vld [vmem:[%s613_s3 + $0x8] sm:$0xff]  ;;  %v169_v26 = vld [vmem:[%s613_s3 + $0x98] sm:$0xff]  ;;  %v152_v30 = vld [vmem:[%s613_s3 + $0x10] sm:$0xff] }
   0x8   :  { %v340_v28 = vpack.c.bf16 %v151_v24, %v150_v22  ;;  %v342_v29 = vpack.c.bf16 %v169_v26, %v168_v25  ;;  %v153_v31 = vld [vmem:[%s613_s3 + $0x18] sm:$0xff]  ;;  %v170_v32 = vld [vmem:[%s613_s3 + $0xa0] sm:$0xff]  ;;  %v47_v35 = vld [vmem:[%s611_s1 + $0x70] sm:$0xff] }
   0x9   :  { %329 = vmatpush1.bf16.msra.mxu0 %v328_v14  ;;  %v45_v34 = vld [vmem:[%s611_s1 + $0x60] sm:$0xff]  ;;  %339 = vmatprep.subr.bf16.mxu1 %v338_v23  ;;  %v171_v36 = vld [vmem:[%s613_s3 + $0xa8] sm:$0xff]  ;;  %v344_v37 = vpack.c.bf16 %v153_v31, %v152_v30  ;;  %v172_v42 = vld [vmem:[%s613_s3 + $0xb0] sm:$0xff] }
   0xa   :  { %331 = vmatprep.subr.bf16.mxu0 %v330_v16  ;;  %341 = vmatpush3.bf16.msra.mxu1 %v340_v28  ;;  %v346_v38 = vpack.c.bf16 %v171_v36, %v170_v32  ;;  %v154_v39 = vld [vmem:[%s613_s3 + $0x20] sm:$0xff]  ;;  %v155_v40 = vld [vmem:[%s613_s3 + $0x28] sm:$0xff]  ;;  %v336_v41 = vpack.c.bf16 %v47_v35, %v45_v34  ;;  %v173_v43 = vld [vmem:[%s613_s3 + $0xb8] sm:$0xff] }
   0xb   :  { %343 = vmatprep.subr.bf16.mxu1 %v342_v29  ;;  %v348_v44 = vpack.c.bf16 %v155_v40, %v154_v39  ;;  %v350_v45 = vpack.c.bf16 %v173_v43, %v172_v42  ;;  %v156_v46 = vld [vmem:[%s613_s3 + $0x30] sm:$0xff]  ;;  %v157_v47 = vld [vmem:[%s613_s3 + $0x38] sm:$0xff] }
   0xd   :  { %333 = vmatpush1.bf16.msra.mxu0 %v332_v27 }
   0xe   :  { %335 = vmatprep.subr.bf16.mxu0 %v334_v33  ;;  %345 = vmatpush3.bf16.msra.mxu1 %v344_v37 }
   0xf   :  { %347 = vmatprep.subr.bf16.mxu1 %v346_v38 }
  0x10   :  { %10 = vsyncpa [#allocation4], 0  ;;  %v21_v48 = vld [vmem:[%s610_s0] sm:$0xff]  ;;  %vm30_vm0 = vcmask 523264   ;;  %v175_v50 = vld [vmem:[%s613_s3 + $0xc8] sm:$0xff]  ;;  %v352_v51 = vpack.c.bf16 %v157_v47, %v156_v46  ;;  %v51_v11 = vlaneseq  ;;  %s399_s17 = smov [#allocation3]  }
  0x11   :  { %337 = vmatpush1.bf16.msra.mxu0 %v336_v41  ;;  %v174_v49 = vld [vmem:[%s613_s3 + $0xc0] sm:$0xff]  ;;  %v159_v54 = vld [vmem:[%s613_s3 + $0x48] sm:$0xff]  ;;  %v176_v56 = vld [vmem:[%s613_s3 + $0xd0] sm:$0xff] }
  0x12   :  { %349 = vmatpush3.bf16.msra.mxu1 %v348_v44  ;;  %v354_v52 = vpack.c.bf16 %v175_v50, %v174_v49  ;;  %v158_v53 = vld [vmem:[%s613_s3 + $0x40] sm:$0xff]  ;;  %v22_v55 = vld [vmem:[%s610_s0 + $0x8] sm:$0xff]  ;;  %v177_v57 = vld [vmem:[%s613_s3 + $0xd8] sm:$0xff]  ;;  %v52_v12 = vshrl.u32 %v51_v11, 7 }
  0x13   :  { %351 = vmatprep.subr.bf16.mxu1 %v350_v45  ;;  %v356_v58 = vpack.c.bf16 %v159_v54, %v158_v53  ;;  %v358_v59 = vpack.c.bf16 %v177_v57, %v176_v56  ;;  %v160_v60 = vld [vmem:[%s613_s3 + $0x50] sm:$0xff]  ;;  %v161_v61 = vld [vmem:[%s613_s3 + $0x58] sm:$0xff]  ;;  %v178_v62 = vld [vmem:[%s613_s3 + $0xe0] sm:$0xff] }
  0x14   :  { %282 = vmatmul.mubr.msk.f32.vlgmr.msra.gmra.mrb[0].mxu0 %vm30_vm0, %v21_v48  ;;  %v179_v63 = vld [vmem:[%s613_s3 + $0xe8] sm:$0xff]  ;;  %v360_v0 = vpack.c.bf16 %v161_v61, %v160_v60  ;;  %v162_v2 = vld [vmem:[%s613_s3 + $0x60] sm:$0xff]  ;;  %v180_v5 = vld [vmem:[%s613_s3 + $0xf0] sm:$0xff]  ;;  %v53_v13 = vsub.s32 0, %v52_v12  ;;  %v57_v15 = vsub.s32 1, %v52_v12 }
  0x15   :  { %137 = vmatprep.mubr.f32.mxu0 %v398_v7  ;;  %v362_v1 = vpack.c.bf16 %v179_v63, %v178_v62  ;;  %v163_v3 = vld [vmem:[%s613_s3 + $0x68] sm:$0xff]  ;;  %v181_v6 = vld [vmem:[%s613_s3 + $0xf8] sm:$0xff]  ;;  %v164_v8 = vld [vmem:[%s613_s3 + $0x70] sm:$0xff] }
  0x16   :  { %353 = vmatpush3.bf16.msra.mxu1 %v352_v51  ;;  %v364_v4 = vpack.c.bf16 %v163_v3, %v162_v2  ;;  %v366_v7 = vpack.c.bf16 %v181_v6, %v180_v5  ;;  %v165_v9 = vld [vmem:[%s613_s3 + $0x78] sm:$0xff]  ;;  %v49_v14 = vld [vmem:[%s612_s2] sm:$0x3] }
  0x17   :  { %355 = vmatprep.subr.bf16.mxu1 %v354_v52  ;;  %v368_v10 = vpack.c.bf16 %v165_v9, %v164_v8  ;;  %v54_v16 = vrot.slane %v49_v14, %v53_v13  ;;  %v58_v17 = vrot.slane %v49_v14, %v57_v15  ;;  %v281_v30 = vld [vmem:[%s614_s4] ss:$0 sm:$0xff]  ;;  %s270_s4 = sshll.u32 %s399_s17, 4  ;;  %s271_s4 = int_to_ptr.vmem [resolvable:$true] %s270_s4 }
  0x18   :  { %283 = vmatmul.mubr.msk.f32.gmra.mrb[2].mxu0 %vm30_vm0, %v22_v55  ;;  %31 = vst.msk [vmem:[#allocation2] sm:$0xff] %vm30_vm0, %v281_v30  ;;  %32 = vst.msk [vmem:[#allocation2 + $0x8] sm:$0xff] %vm30_vm0, %v281_v30  ;;  %s374_s18 = scalar_lea.vmem %s271_s4, 256  ;;  %p379_p1 = scmp.lt.s32.totalorder %s271_s4, %s271_s4 }
  0x19   :  { %p375_p0 = scmp.ne.s32.totalorder %s271_s4, %s374_s18  ;;  %p380_p2 = scmp.lt.s32.totalorder %s374_s18, %s374_s18 }
  0x1a   :  { %357 = vmatpush3.bf16.msra.mxu1 %v356_v58 }
  0x1b   :  { %359 = vmatprep.subr.bf16.mxu1 %v358_v59  ;;  %p381_p3 = por %p380_p2, %p379_p1 }
  0x1d   :  { %p382_p4 = pnand %p381_p3, %p375_p0 }
  0x1e   :  { %361 = vmatpush3.bf16.msra.mxu1 %v360_v0 }
  0x1f   :  { %363 = vmatprep.subr.bf16.mxu1 %v362_v1  ;;  %v148_v32 = vld [vmem:[#allocation2] sm:$0xff]  ;;  %v149_v37 = vld [vmem:[#allocation2 + $0x8] sm:$0xff] }
  0x22   :  { %365 = vmatpush3.bf16.msra.mxu1 %v364_v4 }
  0x23   :  { %367 = vmatprep.subr.bf16.mxu1 %v366_v7 }
  0x26   :  { %369 = vmatpush3.bf16.msra.mxu1 %v368_v10 }
  0xe7   :  { %v133_v18 = vpop.f32.mrb[0].mxu0 }
  0xe8   :  { %v134_v19 = vadd.f32 %v133_v18, %v54_v16  ;;  %v135_v20 = vpop.f32.mrb[1].mxu0 }
  0xe9   :  { %v136_v21 = vadd.f32 %v135_v20, %v58_v17 }
  0xea   :  { %v144_v24 = vmax.f32 %v134_v19, 0.0 }
  0xeb   :  { %v139_v22 = vpop.f32.mrb[2].mxu0  ;;  %v145_v23 = vmax.f32 %v136_v21, 0.0 }
  0xec   :  { %v140_v25 = vadd.f32 %v139_v22, %v54_v16  ;;  %v141_v26 = vpop.f32.mrb[3].mxu0 }
  0xed   :  { %v142_v27 = vadd.f32 %v141_v26, %v58_v17  ;;  %246 = vmatprep.mubr.f32.mxu1 %v145_v23 }
  0xee   :  { %247 = vmatmul.mubr.f32.vlgmr.msra.gmra.mrb[0].mxu1 %v144_v24  ;;  %v146_v29 = vmax.f32 %v140_v25, 0.0 }
  0xef   :  { %v147_v28 = vmax.f32 %v142_v27, 0.0 }
  0xf1   :  { %251 = vmatprep.mubr.f32.mxu1 %v147_v28 }
  0xf2   :  { %252 = vmatmul.mubr.f32.gmra.mrb[2].mxu1 %v146_v29 }
 0x1c1   :  { %v316_v31 = vpop.f32.mrb[0].mxu1 }
 0x1c2   :  { %v317_v33 = vpop.f32.mrb[1].mxu1 }
 0x1c3   :  { %v318_v34 = vadd.f32 %v317_v33, %v316_v31 }
 0x1c5   :  { %v257_v35 = vadd.f32 %v318_v34, %v148_v32  ;;  %v319_v36 = vpop.f32.mrb[2].mxu1 }
 0x1c6   :  { %v320_v38 = vpop.f32.mrb[3].mxu1 }
 0x1c7   :  { %259 = vst.msk [vmem:[#allocation2] sm:$0xff] %vm30_vm0, %v257_v35  ;;  %v321_v39 = vadd.f32 %v320_v38, %v319_v36 }
 0x1c9   :  { %v258_v40 = vadd.f32 %v321_v39, %v149_v37 }
 0x1cb   :  { %260 = vst.msk [vmem:[#allocation2 + $0x8] sm:$0xff] %vm30_vm0, %v258_v40 }
 0x1ce   :  { %v261_v41 = vld [vmem:[#allocation2] sm:$0xff] }
 0x1cf   :  { %263 = vst.msk [vmem:[#allocation3] sm:$0xff] %vm30_vm0, %v261_v41 }
 0x1d2   :  { %v262_v42 = vld [vmem:[#allocation2 + $0x8] sm:$0xff] }
 0x1d3   :  { %264 = vst.msk [vmem:[#allocation3 + $0x8] sm:$0xff] %vm30_vm0, %v262_v42 }
 0x1d4   :  { %385 = shalt.err (!%p382_p4)
}
 0x1d5   :  { %s386_s21 = scalar_lea.hbm %s615_s5, 256 }
 0x1d6   :  { %p387_p5 = scmp.ne.s32.totalorder %s615_s5, %s386_s21  ;;  %p390_p6 = scmp.lt.u32.totalorder %s386_s21, %s615_s5 }
 0x1d8   :  { %p392_p7 = pnand %p390_p6, %p387_p5 }
 0x1da   :  { %395 = shalt.err (!%p392_p7)
}
 0x1db   :  { %s400_s24 = smov 128   ;;  %s401_s25 = smov 8  }
 0x1dc   :  { %276 = dma.vmem_to_hbm [thread:$0]  %s271_s4, 256, %s615_s5, [#allocation4], %s400_s24, %s400_s24, %s401_s25  }
 0x1dd   :  { %396 = dma.done.wait [#allocation4], 256  }
 0x1de   :  { %397 = vsyncadd [#allocation4], 4294967040 }
 0x1df   :  { %280 = vsyncpa [#allocation4], 1 }

</bundles_post_ra>
